<compile_context>
chip_gen: v6e
topology: v6e:2x2x1
jax: 0.10.0
libtpu: 0.0.40
codegen_flags: <defaults>
</compile_context>

<pallas_src>
import functools
import math

import jax
import jax.numpy as jnp
import numpy as np
from jax.experimental import pallas as pl
from jax.experimental.pallas import tpu as pltpu


def _layernorm(h, gamma, beta, eps=1e-5):
    # f32 elementwise math; matches torch.nn.LayerNorm (biased var, eps=1e-5).
    mu = jnp.mean(h, axis=-1, keepdims=True)
    var = jnp.mean((h - mu) ** 2, axis=-1, keepdims=True)
    return (h - mu) * jax.lax.rsqrt(var + eps) * gamma + beta


def encoder_layer_kernel(
    x_ref,
    wqkv_ref, bqkv_ref,        # fused QKV projection
    wo_ref, bo_ref,            # output projection, wo as (H, dh, D)
    w1_ref, b1_ref, w2_ref, b2_ref,
    g1_ref, be1_ref, g2_ref, be2_ref,
    out_ref,
    *, n_heads,
):
    TB, S, D = x_ref.shape
    dh = D // n_heads
    scale = 1.0 / math.sqrt(dh)
    R = TB * S

    x_bf = x_ref[...]                         # (TB, S, D) bf16
    x2_bf = x_bf.reshape(R, D)                # merge leading dims (layout-safe)
    x_f32 = x2_bf.astype(jnp.float32)

    # --- fused Q/K/V projection: one wide MXU pass, f32 accumulation --------
    qkv = jnp.dot(x2_bf, wqkv_ref[...], preferred_element_type=jnp.float32)
    qkv = qkv + bqkv_ref[...]                 # (R, 3D) f32
    qkv = qkv.reshape(TB, S, 3 * D)

    # --- multi-head self-attention ------------------------------------------
    # Static loop over heads; matmuls batched over the TB rows of the block.
    # Head outputs are folded straight into the output projection (no concat).
    attn = jnp.zeros((R, D), jnp.float32)
    for h in range(n_heads):
        q_h = (qkv[:, :, h * dh:(h + 1) * dh] * scale).astype(jnp.bfloat16)
        k_h = qkv[:, :, D + h * dh: D + (h + 1) * dh].astype(jnp.bfloat16)
        v_h = qkv[:, :, 2 * D + h * dh: 2 * D + (h + 1) * dh].astype(jnp.bfloat16)

        s_h = jnp.einsum("bqd,bkd->bqk", q_h, k_h,
                         preferred_element_type=jnp.float32)      # (TB, S, S)
        s_h = s_h - jnp.max(s_h, axis=-1, keepdims=True)
        p_h = jnp.exp(s_h)
        p_h = p_h * pl.reciprocal(jnp.sum(p_h, axis=-1, keepdims=True),
                                  approx=True)
        ctx = jnp.einsum("bqk,bkd->bqd", p_h.astype(jnp.bfloat16), v_h,
                         preferred_element_type=jnp.float32)      # (TB, S, dh)
        attn = attn + jnp.dot(ctx.reshape(R, dh).astype(jnp.bfloat16),
                              wo_ref[h],
                              preferred_element_type=jnp.float32)  # (R, D)
    attn = attn + bo_ref[...]

    # --- residual + norm1 ----------------------------------------------------
    h1 = _layernorm(x_f32 + attn, g1_ref[...], be1_ref[...])       # (R, D) f32

    # --- feed-forward (bf16 matmuls, f32 accumulation) -----------------------
    ff = jnp.dot(h1.astype(jnp.bfloat16), w1_ref[...],
                 preferred_element_type=jnp.float32) + b1_ref[...]
    ff = jnp.maximum(ff, 0.0)
    ff = jnp.dot(ff.astype(jnp.bfloat16), w2_ref[...],
                 preferred_element_type=jnp.float32) + b2_ref[...]

    # --- residual + norm2 ----------------------------------------------------
    out = _layernorm(h1 + ff, g2_ref[...], be2_ref[...])
    out_ref[...] = out.reshape(TB, S, D).astype(out_ref.dtype)


def encoder_layer(x, params, n_heads, block_b=None):
    B, S, D = x.shape
    F = params["w1"].shape[1]
    assert D % n_heads == 0
    dh = D // n_heads

    if block_b is None:
        # Largest divisor of B that still leaves >= 2 grid steps when B >= 2
        # (keeps both v7x TensorCores busy) while amortizing per-step overhead.
        target = max(1, B // 2)
        block_b = max(d for d in range(1, target + 1) if B % d == 0)
    assert B % block_b == 0
    grid_b = B // block_b

    # ---- wrapper-side repacking / casting (done once, outside the kernel) ---
    bf16 = jnp.bfloat16
    x_bf = x.astype(bf16)
    wqkv = jnp.concatenate([params["wq"], params["wk"], params["wv"]],
                           axis=1).astype(bf16)                    # (D, 3D)
    bqkv = jnp.concatenate([params["bq"], params["bk"], params["bv"]],
                           axis=1)                                 # (1, 3D) f32
    wo_h = params["wo"].reshape(n_heads, dh, D).astype(bf16)       # (H, dh, D)
    w1 = params["w1"].astype(bf16)
    w2 = params["w2"].astype(bf16)

    def rep(shape):
        return pl.BlockSpec(shape, lambda b, _n=len(shape): (0,) * _n)

    in_specs = [
        pl.BlockSpec((block_b, S, D), lambda b: (b, 0, 0)),        # x
        rep((D, 3 * D)), rep((1, 3 * D)),                          # wqkv, bqkv
        rep((n_heads, dh, D)), rep((1, D)),                        # wo, bo
        rep((D, F)), rep((1, F)),                                  # w1, b1
        rep((F, D)), rep((1, D)),                                  # w2, b2
        rep((1, D)), rep((1, D)),                                  # gamma1, beta1
        rep((1, D)), rep((1, D)),                                  # gamma2, beta2
    ]

    kernel = functools.partial(encoder_layer_kernel, n_heads=n_heads)
    return pl.pallas_call(
        kernel,
        out_shape=jax.ShapeDtypeStruct((B, S, D), jnp.float32),
        grid_spec=pltpu.PrefetchScalarGridSpec(
            num_scalar_prefetch=0,
            grid=(grid_b,),
            in_specs=in_specs,
            out_specs=pl.BlockSpec((block_b, S, D), lambda b: (b, 0, 0)),
        ),
        compiler_params=pltpu.CompilerParams(
            dimension_semantics=("parallel",),
            vmem_limit_bytes=48 * 1024 * 1024,
        ),
    )(
        x_bf,
        wqkv, bqkv, wo_h, params["bo"],
        w1, params["b1"], w2, params["b2"],
        params["g1"], params["be1"], params["g2"], params["be2"],
    )


def reference(x, params, n_heads):
    """Pure-JAX f32 reference (standard MHA + norms + FFN, dropout=identity)."""
    B, S, D = x.shape
    dh = D // n_heads
    q = x @ params["wq"] + params["bq"]
    k = x @ params["wk"] + params["bk"]
    v = x @ params["wv"] + params["bv"]
    q = q.reshape(B, S, n_heads, dh)
    k = k.reshape(B, S, n_heads, dh)
    v = v.reshape(B, S, n_heads, dh)
    s = jnp.einsum("bqhd,bkhd->bhqk", q, k) / math.sqrt(dh)
    p = jax.nn.softmax(s, axis=-1)
    ctx = jnp.einsum("bhqk,bkhd->bqhd", p, v).reshape(B, S, D)
    attn = ctx @ params["wo"] + params["bo"]
    h1 = _layernorm(x + attn, params["g1"], params["be1"])
    ff = jnp.maximum(h1 @ params["w1"] + params["b1"], 0.0)
    ff = ff @ params["w2"] + params["b2"]
    return _layernorm(h1 + ff, params["g2"], params["be2"])


def make_params(key, d_model, d_ff):
    ks = jax.random.split(key, 8)
    s = 0.02
    D, F = d_model, d_ff
    return {
        "wq": jax.random.normal(ks[0], (D, D), jnp.float32) * s,
        "bq": jnp.zeros((1, D), jnp.float32),
        "wk": jax.random.normal(ks[1], (D, D), jnp.float32) * s,
        "bk": jnp.zeros((1, D), jnp.float32),
        "wv": jax.random.normal(ks[2], (D, D), jnp.float32) * s,
        "bv": jnp.zeros((1, D), jnp.float32),
        "wo": jax.random.normal(ks[3], (D, D), jnp.float32) * s,
        "bo": jnp.zeros((1, D), jnp.float32),
        "w1": jax.random.normal(ks[4], (D, F), jnp.float32) * s,
        "b1": jax.random.normal(ks[5], (1, F), jnp.float32) * s,
        "w2": jax.random.normal(ks[6], (F, D), jnp.float32) * s,
        "b2": jax.random.normal(ks[7], (1, D), jnp.float32) * s,
        "g1": jnp.ones((1, D), jnp.float32),
        "be1": jnp.zeros((1, D), jnp.float32),
        "g2": jnp.ones((1, D), jnp.float32),
        "be2": jnp.zeros((1, D), jnp.float32),
    }


if __name__ == "__main__":
    B, S, d_model, n_heads, d_ff = 2, 8, 32, 4, 64
    key = jax.random.PRNGKey(0)
    kx, kp = jax.random.split(key)
    x = jax.random.normal(kx, (B, S, d_model), jnp.float32)
    params = make_params(kp, d_model, d_ff)

    out = encoder_layer(x, params, n_heads)
    jax.block_until_ready(out)
    assert out.shape == (B, S, d_model)

    ref = reference(x, params, n_heads)
    np.testing.assert_allclose(np.asarray(out), np.asarray(ref),
                               rtol=3e-2, atol=3e-2)
    print("KERNEL_OK")
</pallas_src>

<mosaic_0001>
module attributes {stable_mosaic.version = 11 : i64} {
  func.func @encoder_layer_kernel(%arg0: i32, %arg1: memref<1x8x32xbf16, #tpu.memory_space<vmem>>, %arg2: memref<32x96xbf16, #tpu.memory_space<vmem>>, %arg3: memref<1x96xf32, #tpu.memory_space<vmem>>, %arg4: memref<4x8x32xbf16, #tpu.memory_space<vmem>>, %arg5: memref<1x32xf32, #tpu.memory_space<vmem>>, %arg6: memref<32x64xbf16, #tpu.memory_space<vmem>>, %arg7: memref<1x64xf32, #tpu.memory_space<vmem>>, %arg8: memref<64x32xbf16, #tpu.memory_space<vmem>>, %arg9: memref<1x32xf32, #tpu.memory_space<vmem>>, %arg10: memref<1x32xf32, #tpu.memory_space<vmem>>, %arg11: memref<1x32xf32, #tpu.memory_space<vmem>>, %arg12: memref<1x32xf32, #tpu.memory_space<vmem>>, %arg13: memref<1x32xf32, #tpu.memory_space<vmem>>, %arg14: memref<1x8x32xf32, #tpu.memory_space<vmem>>) attributes {dimension_semantics = [#tpu.dimension_semantics<parallel>], iteration_bounds = array<i64: 2>, scalar_prefetch = 0 : i64, scratch_operands = 0 : i64, tpu.core_type = #tpu.core_type<tc>, window_params = [{transform_indices = @transform_0, window_bounds = array<i64: 1, 8, 32>}, {pipeline_mode = #tpu.pipeline_mode<synchronous>, transform_indices = @transform_1, window_bounds = array<i64: 32, 96>}, {pipeline_mode = #tpu.pipeline_mode<synchronous>, transform_indices = @transform_2, window_bounds = array<i64: 1, 96>}, {pipeline_mode = #tpu.pipeline_mode<synchronous>, transform_indices = @transform_3, window_bounds = array<i64: 4, 8, 32>}, {pipeline_mode = #tpu.pipeline_mode<synchronous>, transform_indices = @transform_4, window_bounds = array<i64: 1, 32>}, {pipeline_mode = #tpu.pipeline_mode<synchronous>, transform_indices = @transform_5, window_bounds = array<i64: 32, 64>}, {pipeline_mode = #tpu.pipeline_mode<synchronous>, transform_indices = @transform_6, window_bounds = array<i64: 1, 64>}, {pipeline_mode = #tpu.pipeline_mode<synchronous>, transform_indices = @transform_7, window_bounds = array<i64: 64, 32>}, {pipeline_mode = #tpu.pipeline_mode<synchronous>, transform_indices = @transform_8, window_bounds = array<i64: 1, 32>}, {pipeline_mode = #tpu.pipeline_mode<synchronous>, transform_indices = @transform_9, window_bounds = array<i64: 1, 32>}, {pipeline_mode = #tpu.pipeline_mode<synchronous>, transform_indices = @transform_10, window_bounds = array<i64: 1, 32>}, {pipeline_mode = #tpu.pipeline_mode<synchronous>, transform_indices = @transform_11, window_bounds = array<i64: 1, 32>}, {pipeline_mode = #tpu.pipeline_mode<synchronous>, transform_indices = @transform_12, window_bounds = array<i64: 1, 32>}, {transform_indices = @transform_13, window_bounds = array<i64: 1, 8, 32>}]} {
    %c0 = arith.constant 0 : index
    %c0_0 = arith.constant 0 : index
    %c0_1 = arith.constant 0 : index
    %0 = vector.load %arg1[%c0, %c0_0, %c0_1] : memref<1x8x32xbf16, #tpu.memory_space<vmem>>, vector<1x8x32xbf16>
    %1 = vector.shape_cast %0 : vector<1x8x32xbf16> to vector<8x32xbf16>
    %2 = arith.extf %1 : vector<8x32xbf16> to vector<8x32xf32>
    %c0_2 = arith.constant 0 : index
    %c0_3 = arith.constant 0 : index
    %3 = vector.load %arg2[%c0_2, %c0_3] : memref<32x96xbf16, #tpu.memory_space<vmem>>, vector<32x96xbf16>
    %cst = arith.constant dense<0.000000e+00> : vector<8x96xf32>
    %4 = tpu.matmul %1, %3, %cst {dimension_numbers = #tpu.dot_dimension_numbers<[1], [0], [0], [1], [0, 0, 1, 1], [], []>} : vector<8x32xbf16>, vector<32x96xbf16>, vector<8x96xf32> -> vector<8x96xf32>
    %c0_4 = arith.constant 0 : index
    %c0_5 = arith.constant 0 : index
    %5 = vector.load %arg3[%c0_4, %c0_5] : memref<1x96xf32, #tpu.memory_space<vmem>>, vector<1x96xf32>
    %6 = vector.broadcast %5 : vector<1x96xf32> to vector<8x96xf32>
    %7 = arith.addf %4, %6 : vector<8x96xf32>
    %8 = vector.shape_cast %7 : vector<8x96xf32> to vector<1x8x96xf32>
    %cst_6 = arith.constant 0.000000e+00 : f32
    %9 = vector.broadcast %cst_6 : f32 to vector<8x32xf32>
    %10 = vector.extract_strided_slice %8 {offsets = [0, 0, 0], sizes = [1, 8, 8], strides = [1, 1, 1]} : vector<1x8x96xf32> to vector<1x8x8xf32>
    %cst_7 = arith.constant 0.353553385 : f32
    %11 = vector.broadcast %cst_7 : f32 to vector<1x8x8xf32>
    %12 = arith.mulf %10, %11 : vector<1x8x8xf32>
    %13 = arith.truncf %12 : vector<1x8x8xf32> to vector<1x8x8xbf16>
    %14 = vector.extract_strided_slice %8 {offsets = [0, 0, 32], sizes = [1, 8, 8], strides = [1, 1, 1]} : vector<1x8x96xf32> to vector<1x8x8xf32>
    %15 = arith.truncf %14 : vector<1x8x8xf32> to vector<1x8x8xbf16>
    %16 = vector.extract_strided_slice %8 {offsets = [0, 0, 64], sizes = [1, 8, 8], strides = [1, 1, 1]} : vector<1x8x96xf32> to vector<1x8x8xf32>
    %17 = arith.truncf %16 : vector<1x8x8xf32> to vector<1x8x8xbf16>
    "tpu.trace_start"() <{level = 10 : i32, message = "bqd,bkd->bqk"}> : () -> ()
    %cst_8 = arith.constant dense<0.000000e+00> : vector<1x8x8xf32>
    %18 = tpu.matmul %13, %15, %cst_8 {dimension_numbers = #tpu.dot_dimension_numbers<[2], [2], [1], [1], [0, 0, 0, 1, 1, 1], [0], [0]>} : vector<1x8x8xbf16>, vector<1x8x8xbf16>, vector<1x8x8xf32> -> vector<1x8x8xf32>
    "tpu.trace_stop"() : () -> ()
    %cst_9 = arith.constant dense<0xFF800000> : vector<1x8xf32>
    %19 = vector.multi_reduction <maximumf>, %18, %cst_9 [2] : vector<1x8x8xf32> to vector<1x8xf32>
    %20 = vector.shape_cast %19 : vector<1x8xf32> to vector<1x8x1xf32>
    %21 = vector.broadcast %20 : vector<1x8x1xf32> to vector<1x8x8xf32>
    %22 = arith.subf %18, %21 : vector<1x8x8xf32>
    %23 = math.exp %22 : vector<1x8x8xf32>
    %cst_10 = arith.constant dense<0.000000e+00> : vector<1x8xf32>
    %24 = vector.multi_reduction <add>, %23, %cst_10 [2] : vector<1x8x8xf32> to vector<1x8xf32>
    %25 = vector.shape_cast %24 : vector<1x8xf32> to vector<1x8x1xf32>
    %26 = tpu.reciprocal %25 {approx = true} : vector<1x8x1xf32> -> vector<1x8x1xf32>
    %27 = vector.broadcast %26 : vector<1x8x1xf32> to vector<1x8x8xf32>
    %28 = arith.mulf %23, %27 : vector<1x8x8xf32>
    %29 = arith.truncf %28 : vector<1x8x8xf32> to vector<1x8x8xbf16>
    "tpu.trace_start"() <{level = 10 : i32, message = "bqk,bkd->bqd"}> : () -> ()
    %cst_11 = arith.constant dense<0.000000e+00> : vector<1x8x8xf32>
    %30 = tpu.matmul %29, %17, %cst_11 {dimension_numbers = #tpu.dot_dimension_numbers<[2], [1], [1], [2], [0, 0, 0, 1, 1, 2], [0], [0]>} : vector<1x8x8xbf16>, vector<1x8x8xbf16>, vector<1x8x8xf32> -> vector<1x8x8xf32>
    "tpu.trace_stop"() : () -> ()
    %31 = vector.shape_cast %30 : vector<1x8x8xf32> to vector<8x8xf32>
    %32 = arith.truncf %31 : vector<8x8xf32> to vector<8x8xbf16>
    %c0_12 = arith.constant 0 : index
    %c0_13 = arith.constant 0 : index
    %c0_14 = arith.constant 0 : index
    %33 = vector.load %arg4[%c0_12, %c0_13, %c0_14] : memref<4x8x32xbf16, #tpu.memory_space<vmem>>, vector<1x8x32xbf16>
    %34 = vector.shape_cast %33 : vector<1x8x32xbf16> to vector<8x32xbf16>
    %cst_15 = arith.constant dense<0.000000e+00> : vector<8x32xf32>
    %35 = tpu.matmul %32, %34, %cst_15 {dimension_numbers = #tpu.dot_dimension_numbers<[1], [0], [0], [1], [0, 0, 1, 1], [], []>} : vector<8x8xbf16>, vector<8x32xbf16>, vector<8x32xf32> -> vector<8x32xf32>
    %36 = arith.addf %9, %35 : vector<8x32xf32>
    %37 = vector.extract_strided_slice %8 {offsets = [0, 0, 8], sizes = [1, 8, 8], strides = [1, 1, 1]} : vector<1x8x96xf32> to vector<1x8x8xf32>
    %cst_16 = arith.constant 0.353553385 : f32
    %38 = vector.broadcast %cst_16 : f32 to vector<1x8x8xf32>
    %39 = arith.mulf %37, %38 : vector<1x8x8xf32>
    %40 = arith.truncf %39 : vector<1x8x8xf32> to vector<1x8x8xbf16>
    %41 = vector.extract_strided_slice %8 {offsets = [0, 0, 40], sizes = [1, 8, 8], strides = [1, 1, 1]} : vector<1x8x96xf32> to vector<1x8x8xf32>
    %42 = arith.truncf %41 : vector<1x8x8xf32> to vector<1x8x8xbf16>
    %43 = vector.extract_strided_slice %8 {offsets = [0, 0, 72], sizes = [1, 8, 8], strides = [1, 1, 1]} : vector<1x8x96xf32> to vector<1x8x8xf32>
    %44 = arith.truncf %43 : vector<1x8x8xf32> to vector<1x8x8xbf16>
    "tpu.trace_start"() <{level = 10 : i32, message = "bqd,bkd->bqk"}> : () -> ()
    %cst_17 = arith.constant dense<0.000000e+00> : vector<1x8x8xf32>
    %45 = tpu.matmul %40, %42, %cst_17 {dimension_numbers = #tpu.dot_dimension_numbers<[2], [2], [1], [1], [0, 0, 0, 1, 1, 1], [0], [0]>} : vector<1x8x8xbf16>, vector<1x8x8xbf16>, vector<1x8x8xf32> -> vector<1x8x8xf32>
    "tpu.trace_stop"() : () -> ()
    %cst_18 = arith.constant dense<0xFF800000> : vector<1x8xf32>
    %46 = vector.multi_reduction <maximumf>, %45, %cst_18 [2] : vector<1x8x8xf32> to vector<1x8xf32>
    %47 = vector.shape_cast %46 : vector<1x8xf32> to vector<1x8x1xf32>
    %48 = vector.broadcast %47 : vector<1x8x1xf32> to vector<1x8x8xf32>
    %49 = arith.subf %45, %48 : vector<1x8x8xf32>
    %50 = math.exp %49 : vector<1x8x8xf32>
    %cst_19 = arith.constant dense<0.000000e+00> : vector<1x8xf32>
    %51 = vector.multi_reduction <add>, %50, %cst_19 [2] : vector<1x8x8xf32> to vector<1x8xf32>
    %52 = vector.shape_cast %51 : vector<1x8xf32> to vector<1x8x1xf32>
    %53 = tpu.reciprocal %52 {approx = true} : vector<1x8x1xf32> -> vector<1x8x1xf32>
    %54 = vector.broadcast %53 : vector<1x8x1xf32> to vector<1x8x8xf32>
    %55 = arith.mulf %50, %54 : vector<1x8x8xf32>
    %56 = arith.truncf %55 : vector<1x8x8xf32> to vector<1x8x8xbf16>
    "tpu.trace_start"() <{level = 10 : i32, message = "bqk,bkd->bqd"}> : () -> ()
    %cst_20 = arith.constant dense<0.000000e+00> : vector<1x8x8xf32>
    %57 = tpu.matmul %56, %44, %cst_20 {dimension_numbers = #tpu.dot_dimension_numbers<[2], [1], [1], [2], [0, 0, 0, 1, 1, 2], [0], [0]>} : vector<1x8x8xbf16>, vector<1x8x8xbf16>, vector<1x8x8xf32> -> vector<1x8x8xf32>
    "tpu.trace_stop"() : () -> ()
    %58 = vector.shape_cast %57 : vector<1x8x8xf32> to vector<8x8xf32>
    %59 = arith.truncf %58 : vector<8x8xf32> to vector<8x8xbf16>
    %c1 = arith.constant 1 : index
    %c0_21 = arith.constant 0 : index
    %c0_22 = arith.constant 0 : index
    %60 = vector.load %arg4[%c1, %c0_21, %c0_22] : memref<4x8x32xbf16, #tpu.memory_space<vmem>>, vector<1x8x32xbf16>
    %61 = vector.shape_cast %60 : vector<1x8x32xbf16> to vector<8x32xbf16>
    %cst_23 = arith.constant dense<0.000000e+00> : vector<8x32xf32>
    %62 = tpu.matmul %59, %61, %cst_23 {dimension_numbers = #tpu.dot_dimension_numbers<[1], [0], [0], [1], [0, 0, 1, 1], [], []>} : vector<8x8xbf16>, vector<8x32xbf16>, vector<8x32xf32> -> vector<8x32xf32>
    %63 = arith.addf %36, %62 : vector<8x32xf32>
    %64 = vector.extract_strided_slice %8 {offsets = [0, 0, 16], sizes = [1, 8, 8], strides = [1, 1, 1]} : vector<1x8x96xf32> to vector<1x8x8xf32>
    %cst_24 = arith.constant 0.353553385 : f32
    %65 = vector.broadcast %cst_24 : f32 to vector<1x8x8xf32>
    %66 = arith.mulf %64, %65 : vector<1x8x8xf32>
    %67 = arith.truncf %66 : vector<1x8x8xf32> to vector<1x8x8xbf16>
    %68 = vector.extract_strided_slice %8 {offsets = [0, 0, 48], sizes = [1, 8, 8], strides = [1, 1, 1]} : vector<1x8x96xf32> to vector<1x8x8xf32>
    %69 = arith.truncf %68 : vector<1x8x8xf32> to vector<1x8x8xbf16>
    %70 = vector.extract_strided_slice %8 {offsets = [0, 0, 80], sizes = [1, 8, 8], strides = [1, 1, 1]} : vector<1x8x96xf32> to vector<1x8x8xf32>
    %71 = arith.truncf %70 : vector<1x8x8xf32> to vector<1x8x8xbf16>
    "tpu.trace_start"() <{level = 10 : i32, message = "bqd,bkd->bqk"}> : () -> ()
    %cst_25 = arith.constant dense<0.000000e+00> : vector<1x8x8xf32>
    %72 = tpu.matmul %67, %69, %cst_25 {dimension_numbers = #tpu.dot_dimension_numbers<[2], [2], [1], [1], [0, 0, 0, 1, 1, 1], [0], [0]>} : vector<1x8x8xbf16>, vector<1x8x8xbf16>, vector<1x8x8xf32> -> vector<1x8x8xf32>
    "tpu.trace_stop"() : () -> ()
    %cst_26 = arith.constant dense<0xFF800000> : vector<1x8xf32>
    %73 = vector.multi_reduction <maximumf>, %72, %cst_26 [2] : vector<1x8x8xf32> to vector<1x8xf32>
    %74 = vector.shape_cast %73 : vector<1x8xf32> to vector<1x8x1xf32>
    %75 = vector.broadcast %74 : vector<1x8x1xf32> to vector<1x8x8xf32>
    %76 = arith.subf %72, %75 : vector<1x8x8xf32>
    %77 = math.exp %76 : vector<1x8x8xf32>
    %cst_27 = arith.constant dense<0.000000e+00> : vector<1x8xf32>
    %78 = vector.multi_reduction <add>, %77, %cst_27 [2] : vector<1x8x8xf32> to vector<1x8xf32>
    %79 = vector.shape_cast %78 : vector<1x8xf32> to vector<1x8x1xf32>
    %80 = tpu.reciprocal %79 {approx = true} : vector<1x8x1xf32> -> vector<1x8x1xf32>
    %81 = vector.broadcast %80 : vector<1x8x1xf32> to vector<1x8x8xf32>
    %82 = arith.mulf %77, %81 : vector<1x8x8xf32>
    %83 = arith.truncf %82 : vector<1x8x8xf32> to vector<1x8x8xbf16>
    "tpu.trace_start"() <{level = 10 : i32, message = "bqk,bkd->bqd"}> : () -> ()
    %cst_28 = arith.constant dense<0.000000e+00> : vector<1x8x8xf32>
    %84 = tpu.matmul %83, %71, %cst_28 {dimension_numbers = #tpu.dot_dimension_numbers<[2], [1], [1], [2], [0, 0, 0, 1, 1, 2], [0], [0]>} : vector<1x8x8xbf16>, vector<1x8x8xbf16>, vector<1x8x8xf32> -> vector<1x8x8xf32>
    "tpu.trace_stop"() : () -> ()
    %85 = vector.shape_cast %84 : vector<1x8x8xf32> to vector<8x8xf32>
    %86 = arith.truncf %85 : vector<8x8xf32> to vector<8x8xbf16>
    %c2 = arith.constant 2 : index
    %c0_29 = arith.constant 0 : index
    %c0_30 = arith.constant 0 : index
    %87 = vector.load %arg4[%c2, %c0_29, %c0_30] : memref<4x8x32xbf16, #tpu.memory_space<vmem>>, vector<1x8x32xbf16>
    %88 = vector.shape_cast %87 : vector<1x8x32xbf16> to vector<8x32xbf16>
    %cst_31 = arith.constant dense<0.000000e+00> : vector<8x32xf32>
    %89 = tpu.matmul %86, %88, %cst_31 {dimension_numbers = #tpu.dot_dimension_numbers<[1], [0], [0], [1], [0, 0, 1, 1], [], []>} : vector<8x8xbf16>, vector<8x32xbf16>, vector<8x32xf32> -> vector<8x32xf32>
    %90 = arith.addf %63, %89 : vector<8x32xf32>
    %91 = vector.extract_strided_slice %8 {offsets = [0, 0, 24], sizes = [1, 8, 8], strides = [1, 1, 1]} : vector<1x8x96xf32> to vector<1x8x8xf32>
    %cst_32 = arith.constant 0.353553385 : f32
    %92 = vector.broadcast %cst_32 : f32 to vector<1x8x8xf32>
    %93 = arith.mulf %91, %92 : vector<1x8x8xf32>
    %94 = arith.truncf %93 : vector<1x8x8xf32> to vector<1x8x8xbf16>
    %95 = vector.extract_strided_slice %8 {offsets = [0, 0, 56], sizes = [1, 8, 8], strides = [1, 1, 1]} : vector<1x8x96xf32> to vector<1x8x8xf32>
    %96 = arith.truncf %95 : vector<1x8x8xf32> to vector<1x8x8xbf16>
    %97 = vector.extract_strided_slice %8 {offsets = [0, 0, 88], sizes = [1, 8, 8], strides = [1, 1, 1]} : vector<1x8x96xf32> to vector<1x8x8xf32>
    %98 = arith.truncf %97 : vector<1x8x8xf32> to vector<1x8x8xbf16>
    "tpu.trace_start"() <{level = 10 : i32, message = "bqd,bkd->bqk"}> : () -> ()
    %cst_33 = arith.constant dense<0.000000e+00> : vector<1x8x8xf32>
    %99 = tpu.matmul %94, %96, %cst_33 {dimension_numbers = #tpu.dot_dimension_numbers<[2], [2], [1], [1], [0, 0, 0, 1, 1, 1], [0], [0]>} : vector<1x8x8xbf16>, vector<1x8x8xbf16>, vector<1x8x8xf32> -> vector<1x8x8xf32>
    "tpu.trace_stop"() : () -> ()
    %cst_34 = arith.constant dense<0xFF800000> : vector<1x8xf32>
    %100 = vector.multi_reduction <maximumf>, %99, %cst_34 [2] : vector<1x8x8xf32> to vector<1x8xf32>
    %101 = vector.shape_cast %100 : vector<1x8xf32> to vector<1x8x1xf32>
    %102 = vector.broadcast %101 : vector<1x8x1xf32> to vector<1x8x8xf32>
    %103 = arith.subf %99, %102 : vector<1x8x8xf32>
    %104 = math.exp %103 : vector<1x8x8xf32>
    %cst_35 = arith.constant dense<0.000000e+00> : vector<1x8xf32>
    %105 = vector.multi_reduction <add>, %104, %cst_35 [2] : vector<1x8x8xf32> to vector<1x8xf32>
    %106 = vector.shape_cast %105 : vector<1x8xf32> to vector<1x8x1xf32>
    %107 = tpu.reciprocal %106 {approx = true} : vector<1x8x1xf32> -> vector<1x8x1xf32>
    %108 = vector.broadcast %107 : vector<1x8x1xf32> to vector<1x8x8xf32>
    %109 = arith.mulf %104, %108 : vector<1x8x8xf32>
    %110 = arith.truncf %109 : vector<1x8x8xf32> to vector<1x8x8xbf16>
    "tpu.trace_start"() <{level = 10 : i32, message = "bqk,bkd->bqd"}> : () -> ()
    %cst_36 = arith.constant dense<0.000000e+00> : vector<1x8x8xf32>
    %111 = tpu.matmul %110, %98, %cst_36 {dimension_numbers = #tpu.dot_dimension_numbers<[2], [1], [1], [2], [0, 0, 0, 1, 1, 2], [0], [0]>} : vector<1x8x8xbf16>, vector<1x8x8xbf16>, vector<1x8x8xf32> -> vector<1x8x8xf32>
    "tpu.trace_stop"() : () -> ()
    %112 = vector.shape_cast %111 : vector<1x8x8xf32> to vector<8x8xf32>
    %113 = arith.truncf %112 : vector<8x8xf32> to vector<8x8xbf16>
    %c3 = arith.constant 3 : index
    %c0_37 = arith.constant 0 : index
    %c0_38 = arith.constant 0 : index
    %114 = vector.load %arg4[%c3, %c0_37, %c0_38] : memref<4x8x32xbf16, #tpu.memory_space<vmem>>, vector<1x8x32xbf16>
    %115 = vector.shape_cast %114 : vector<1x8x32xbf16> to vector<8x32xbf16>
    %cst_39 = arith.constant dense<0.000000e+00> : vector<8x32xf32>
    %116 = tpu.matmul %113, %115, %cst_39 {dimension_numbers = #tpu.dot_dimension_numbers<[1], [0], [0], [1], [0, 0, 1, 1], [], []>} : vector<8x8xbf16>, vector<8x32xbf16>, vector<8x32xf32> -> vector<8x32xf32>
    %117 = arith.addf %90, %116 : vector<8x32xf32>
    %c0_40 = arith.constant 0 : index
    %c0_41 = arith.constant 0 : index
    %118 = vector.load %arg5[%c0_40, %c0_41] : memref<1x32xf32, #tpu.memory_space<vmem>>, vector<1x32xf32>
    %119 = vector.broadcast %118 : vector<1x32xf32> to vector<8x32xf32>
    %120 = arith.addf %117, %119 : vector<8x32xf32>
    %121 = arith.addf %2, %120 : vector<8x32xf32>
    %c0_42 = arith.constant 0 : index
    %c0_43 = arith.constant 0 : index
    %122 = vector.load %arg10[%c0_42, %c0_43] : memref<1x32xf32, #tpu.memory_space<vmem>>, vector<1x32xf32>
    %c0_44 = arith.constant 0 : index
    %c0_45 = arith.constant 0 : index
    %123 = vector.load %arg11[%c0_44, %c0_45] : memref<1x32xf32, #tpu.memory_space<vmem>>, vector<1x32xf32>
    %cst_46 = arith.constant dense<0.000000e+00> : vector<8xf32>
    %124 = vector.multi_reduction <add>, %121, %cst_46 [1] : vector<8x32xf32> to vector<8xf32>
    %125 = vector.shape_cast %124 : vector<8xf32> to vector<8x1xf32>
    %cst_47 = arith.constant 3.200000e+01 : f32
    %126 = vector.broadcast %cst_47 : f32 to vector<8x1xf32>
    %127 = arith.divf %125, %126 : vector<8x1xf32>
    %128 = vector.broadcast %127 : vector<8x1xf32> to vector<8x32xf32>
    %129 = arith.subf %121, %128 : vector<8x32xf32>
    %130 = arith.mulf %129, %129 : vector<8x32xf32>
    %cst_48 = arith.constant dense<0.000000e+00> : vector<8xf32>
    %131 = vector.multi_reduction <add>, %130, %cst_48 [1] : vector<8x32xf32> to vector<8xf32>
    %132 = vector.shape_cast %131 : vector<8xf32> to vector<8x1xf32>
    %cst_49 = arith.constant 3.200000e+01 : f32
    %133 = vector.broadcast %cst_49 : f32 to vector<8x1xf32>
    %134 = arith.divf %132, %133 : vector<8x1xf32>
    %135 = vector.broadcast %127 : vector<8x1xf32> to vector<8x32xf32>
    %136 = arith.subf %121, %135 : vector<8x32xf32>
    %cst_50 = arith.constant 9.99999974E-6 : f32
    %137 = vector.broadcast %cst_50 : f32 to vector<8x1xf32>
    %138 = arith.addf %134, %137 : vector<8x1xf32>
    %139 = math.rsqrt %138 : vector<8x1xf32>
    %140 = vector.broadcast %139 : vector<8x1xf32> to vector<8x32xf32>
    %141 = arith.mulf %136, %140 : vector<8x32xf32>
    %142 = vector.broadcast %122 : vector<1x32xf32> to vector<8x32xf32>
    %143 = arith.mulf %141, %142 : vector<8x32xf32>
    %144 = vector.broadcast %123 : vector<1x32xf32> to vector<8x32xf32>
    %145 = arith.addf %143, %144 : vector<8x32xf32>
    %146 = arith.truncf %145 : vector<8x32xf32> to vector<8x32xbf16>
    %c0_51 = arith.constant 0 : index
    %c0_52 = arith.constant 0 : index
    %147 = vector.load %arg6[%c0_51, %c0_52] : memref<32x64xbf16, #tpu.memory_space<vmem>>, vector<32x64xbf16>
    %cst_53 = arith.constant dense<0.000000e+00> : vector<8x64xf32>
    %148 = tpu.matmul %146, %147, %cst_53 {dimension_numbers = #tpu.dot_dimension_numbers<[1], [0], [0], [1], [0, 0, 1, 1], [], []>} : vector<8x32xbf16>, vector<32x64xbf16>, vector<8x64xf32> -> vector<8x64xf32>
    %c0_54 = arith.constant 0 : index
    %c0_55 = arith.constant 0 : index
    %149 = vector.load %arg7[%c0_54, %c0_55] : memref<1x64xf32, #tpu.memory_space<vmem>>, vector<1x64xf32>
    %150 = vector.broadcast %149 : vector<1x64xf32> to vector<8x64xf32>
    %151 = arith.addf %148, %150 : vector<8x64xf32>
    %cst_56 = arith.constant 0.000000e+00 : f32
    %152 = vector.broadcast %cst_56 : f32 to vector<8x64xf32>
    %153 = arith.maximumf %151, %152 : vector<8x64xf32>
    %154 = arith.truncf %153 : vector<8x64xf32> to vector<8x64xbf16>
    %c0_57 = arith.constant 0 : index
    %c0_58 = arith.constant 0 : index
    %155 = vector.load %arg8[%c0_57, %c0_58] : memref<64x32xbf16, #tpu.memory_space<vmem>>, vector<64x32xbf16>
    %cst_59 = arith.constant dense<0.000000e+00> : vector<8x32xf32>
    %156 = tpu.matmul %154, %155, %cst_59 {dimension_numbers = #tpu.dot_dimension_numbers<[1], [0], [0], [1], [0, 0, 1, 1], [], []>} : vector<8x64xbf16>, vector<64x32xbf16>, vector<8x32xf32> -> vector<8x32xf32>
    %c0_60 = arith.constant 0 : index
    %c0_61 = arith.constant 0 : index
    %157 = vector.load %arg9[%c0_60, %c0_61] : memref<1x32xf32, #tpu.memory_space<vmem>>, vector<1x32xf32>
    %158 = vector.broadcast %157 : vector<1x32xf32> to vector<8x32xf32>
    %159 = arith.addf %156, %158 : vector<8x32xf32>
    %160 = arith.addf %145, %159 : vector<8x32xf32>
    %c0_62 = arith.constant 0 : index
    %c0_63 = arith.constant 0 : index
    %161 = vector.load %arg12[%c0_62, %c0_63] : memref<1x32xf32, #tpu.memory_space<vmem>>, vector<1x32xf32>
    %c0_64 = arith.constant 0 : index
    %c0_65 = arith.constant 0 : index
    %162 = vector.load %arg13[%c0_64, %c0_65] : memref<1x32xf32, #tpu.memory_space<vmem>>, vector<1x32xf32>
    %cst_66 = arith.constant dense<0.000000e+00> : vector<8xf32>
    %163 = vector.multi_reduction <add>, %160, %cst_66 [1] : vector<8x32xf32> to vector<8xf32>
    %164 = vector.shape_cast %163 : vector<8xf32> to vector<8x1xf32>
    %cst_67 = arith.constant 3.200000e+01 : f32
    %165 = vector.broadcast %cst_67 : f32 to vector<8x1xf32>
    %166 = arith.divf %164, %165 : vector<8x1xf32>
    %167 = vector.broadcast %166 : vector<8x1xf32> to vector<8x32xf32>
    %168 = arith.subf %160, %167 : vector<8x32xf32>
    %169 = arith.mulf %168, %168 : vector<8x32xf32>
    %cst_68 = arith.constant dense<0.000000e+00> : vector<8xf32>
    %170 = vector.multi_reduction <add>, %169, %cst_68 [1] : vector<8x32xf32> to vector<8xf32>
    %171 = vector.shape_cast %170 : vector<8xf32> to vector<8x1xf32>
    %cst_69 = arith.constant 3.200000e+01 : f32
    %172 = vector.broadcast %cst_69 : f32 to vector<8x1xf32>
    %173 = arith.divf %171, %172 : vector<8x1xf32>
    %174 = vector.broadcast %166 : vector<8x1xf32> to vector<8x32xf32>
    %175 = arith.subf %160, %174 : vector<8x32xf32>
    %cst_70 = arith.constant 9.99999974E-6 : f32
    %176 = vector.broadcast %cst_70 : f32 to vector<8x1xf32>
    %177 = arith.addf %173, %176 : vector<8x1xf32>
    %178 = math.rsqrt %177 : vector<8x1xf32>
    %179 = vector.broadcast %178 : vector<8x1xf32> to vector<8x32xf32>
    %180 = arith.mulf %175, %179 : vector<8x32xf32>
    %181 = vector.broadcast %161 : vector<1x32xf32> to vector<8x32xf32>
    %182 = arith.mulf %180, %181 : vector<8x32xf32>
    %183 = vector.broadcast %162 : vector<1x32xf32> to vector<8x32xf32>
    %184 = arith.addf %182, %183 : vector<8x32xf32>
    %185 = vector.shape_cast %184 : vector<8x32xf32> to vector<1x8x32xf32>
    %c0_71 = arith.constant 0 : index
    %c0_72 = arith.constant 0 : index
    %c0_73 = arith.constant 0 : index
    %186 = vector.load %arg14[%c0_71, %c0_72, %c0_73] : memref<1x8x32xf32, #tpu.memory_space<vmem>>, vector<1x8x32xf32>
    tpu.vector_store %arg14[%c0_71, %c0_72, %c0_73], %185 {strides = array<i32>} : memref<1x8x32xf32, #tpu.memory_space<vmem>>, vector<1x8x32xf32>,
    return
  }
  func.func @transform_0(%arg0: i32) -> (i32, i32, i32) {
    %c0_i32 = arith.constant 0 : i32
    %c0_i32_0 = arith.constant 0 : i32
    %c0_i32_1 = arith.constant 0 : i32
    return %arg0, %c0_i32, %c0_i32_0 : i32, i32, i32
  }
  func.func @transform_1(%arg0: i32) -> (i32, i32) {
    %c0_i32 = arith.constant 0 : i32
    %c0_i32_0 = arith.constant 0 : i32
    %c0_i32_1 = arith.constant 0 : i32
    return %c0_i32, %c0_i32_0 : i32, i32
  }
  func.func @transform_2(%arg0: i32) -> (i32, i32) {
    %c0_i32 = arith.constant 0 : i32
    %c0_i32_0 = arith.constant 0 : i32
    %c0_i32_1 = arith.constant 0 : i32
    return %c0_i32, %c0_i32_0 : i32, i32
  }
  func.func @transform_3(%arg0: i32) -> (i32, i32, i32) {
    %c0_i32 = arith.constant 0 : i32
    %c0_i32_0 = arith.constant 0 : i32
    %c0_i32_1 = arith.constant 0 : i32
    %c0_i32_2 = arith.constant 0 : i32
    return %c0_i32, %c0_i32_0, %c0_i32_1 : i32, i32, i32
  }
  func.func @transform_4(%arg0: i32) -> (i32, i32) {
    %c0_i32 = arith.constant 0 : i32
    %c0_i32_0 = arith.constant 0 : i32
    %c0_i32_1 = arith.constant 0 : i32
    return %c0_i32, %c0_i32_0 : i32, i32
  }
  func.func @transform_5(%arg0: i32) -> (i32, i32) {
    %c0_i32 = arith.constant 0 : i32
    %c0_i32_0 = arith.constant 0 : i32
    %c0_i32_1 = arith.constant 0 : i32
    return %c0_i32, %c0_i32_0 : i32, i32
  }
  func.func @transform_6(%arg0: i32) -> (i32, i32) {
    %c0_i32 = arith.constant 0 : i32
    %c0_i32_0 = arith.constant 0 : i32
    %c0_i32_1 = arith.constant 0 : i32
    return %c0_i32, %c0_i32_0 : i32, i32
  }
  func.func @transform_7(%arg0: i32) -> (i32, i32) {
    %c0_i32 = arith.constant 0 : i32
    %c0_i32_0 = arith.constant 0 : i32
    %c0_i32_1 = arith.constant 0 : i32
    return %c0_i32, %c0_i32_0 : i32, i32
  }
  func.func @transform_8(%arg0: i32) -> (i32, i32) {
    %c0_i32 = arith.constant 0 : i32
    %c0_i32_0 = arith.constant 0 : i32
    %c0_i32_1 = arith.constant 0 : i32
    return %c0_i32, %c0_i32_0 : i32, i32
  }
  func.func @transform_9(%arg0: i32) -> (i32, i32) {
    %c0_i32 = arith.constant 0 : i32
    %c0_i32_0 = arith.constant 0 : i32
    %c0_i32_1 = arith.constant 0 : i32
    return %c0_i32, %c0_i32_0 : i32, i32
  }
  func.func @transform_10(%arg0: i32) -> (i32, i32) {
    %c0_i32 = arith.constant 0 : i32
    %c0_i32_0 = arith.constant 0 : i32
    %c0_i32_1 = arith.constant 0 : i32
    return %c0_i32, %c0_i32_0 : i32, i32
  }
  func.func @transform_11(%arg0: i32) -> (i32, i32) {
    %c0_i32 = arith.constant 0 : i32
    %c0_i32_0 = arith.constant 0 : i32
    %c0_i32_1 = arith.constant 0 : i32
    return %c0_i32, %c0_i32_0 : i32, i32
  }
  func.func @transform_12(%arg0: i32) -> (i32, i32) {
    %c0_i32 = arith.constant 0 : i32
    %c0_i32_0 = arith.constant 0 : i32
    %c0_i32_1 = arith.constant 0 : i32
    return %c0_i32, %c0_i32_0 : i32, i32
  }
  func.func @transform_13(%arg0: i32) -> (i32, i32, i32) {
    %c0_i32 = arith.constant 0 : i32
    %c0_i32_0 = arith.constant 0 : i32
    %c0_i32_1 = arith.constant 0 : i32
    return %arg0, %c0_i32, %c0_i32_0 : i32, i32, i32
  }
}

</mosaic_0001>

<bundles_post_ra>
// kernel: tpu_custom_call.1
= control target key start
LH: loop header
LB: loop body
LE: loop exit
PB: predicated region body
PF: predicated region fallthrough
CT: control target
= control target key end

     0   :  { %s2235_s0 = inlined_call_operand.hbm [shape: bf16[2,8,32], index: 0, kind: input, shape index: {}]   ;;  %s2236_s1 = inlined_call_operand.vmem [shape: bf16[32,96], index: 1, kind: input, shape index: {}]   ;;  %s2237_s2 = inlined_call_operand.vmem [shape: f32[1,96], index: 2, kind: input, shape index: {}]   ;;  %s2238_s3 = inlined_call_operand.vmem [shape: bf16[4,8,32], index: 3, kind: input, shape index: {}]   ;;  %s2239_s4 = inlined_call_operand.vmem [shape: f32[1,32], index: 4, kind: input, shape index: {}]   ;;  %s2240_s5 = inlined_call_operand.vmem [shape: bf16[32,64], index: 5, kind: input, shape index: {}]   ;;  %s2241_s6 = inlined_call_operand.vmem [shape: f32[1,64], index: 6, kind: input, shape index: {}]   ;;  %s2242_s7 = inlined_call_operand.vmem [shape: bf16[64,32], index: 7, kind: input, shape index: {}]   ;;  %s2243_s8 = inlined_call_operand.vmem [shape: f32[1,32], index: 8, kind: input, shape index: {}]   ;;  %s2244_s9 = inlined_call_operand.vmem [shape: f32[1,32], index: 9, kind: input, shape index: {}]   ;;  %s2245_s10 = inlined_call_operand.vmem [shape: f32[1,32], index: 10, kind: input, shape index: {}]   ;;  %s2246_s11 = inlined_call_operand.vmem [shape: f32[1,32], index: 11, kind: input, shape index: {}]   ;;  %s2247_s12 = inlined_call_operand.vmem [shape: f32[1,32], index: 12, kind: input, shape index: {}]   ;;  %s2248_s13 = inlined_call_operand.hbm [shape: f32[2,8,32], index: 13, kind: output, shape index: {}]  }
   0x1   :  { %2257 = sst [smem:[#allocation13_spill]] %s2248_s13 }
   0x2   :  { %18 = vsyncpa [#allocation3], 0 }
   0x3   :  { %20 = vsyncpa [#allocation3 + $0x1], 0 }
   0x4   :  { %21 = vsyncpa [#allocation4], 0 }
   0x5   :  { %23 = vsyncpa [#allocation4 + $0x1], 0  ;;  %s1921_s25 = smov 0   ;;  %s1923_s26 = smov 0  }
   0x6   :  { %s1925_s27 = smov 0   ;;  %s1927_s28 = smov 0  }
   0x7 LB: > { %2258 = sst [smem:[#allocation8_spill]] %s1822_s25  ;;  %s1942_s29 = sadd.s32 4294967295, %s1834_s28   ;;  %s1834_s28 = sphi %s1927_s28, %s2277_s28   ;;  %s1830_s27 = sphi %s1925_s27, %s2279_s27   ;;  %s1826_s26 = sphi %s1923_s26, %s2281_s26   ;;  %s1822_s25 = sphi %s1921_s25, %s2280_s25  }
   0x8   : > { %2259 = sst [smem:[#allocation9_spill]] %s1830_s27  ;;  %s1474_s30 = sadd.s32 4294967294, %s1834_s28  }
   0x9   : > { %s1946_s14 = sadd.s32 1, %s1834_s28   ;;  %s36_s15 = sadd.s32 1, %s1830_s27 }
   0xa   : > { %2260 = sst [smem:[#allocation10_spill]] %s1946_s14  ;;  %s33_s16 = ssub.s32 %s1834_s28, %s1946_s14 }
   0xb   : > { %p43_p0 = scmp.ne.s32.totalorder %s1830_s27, %s1826_s26  ;;  %p34_p1 = scmp.eq.s32.totalorder %s33_s16, 0 }
   0xc   : > { %p44_p2 = scmp.eq.s32.totalorder %s1834_s28, 0  ;;  %p49_p3 = scmp.ne.s32.totalorder %s1826_s26, %s1822_s25 }
   0xd   : > { %p50_p4 = scmp.eq.s32.totalorder %s1942_s29, 0  ;;  %p325_p7 = scmp.eq.s32.totalorder %s1942_s29, 1 }
   0xe   : > { %s1958_s17 = scalar_select %p34_p1, %s1830_s27, %s36_s15  }
   0xf   : > { %p1960_p5 = por %p44_p2, %p43_p0  ;;  %p1964_p6 = por %p50_p4, %p49_p3 }
  0x10   : > { %2261 = sst [smem:[#allocation11_spill]] %s1958_s17  ;;  %p331_p8 = scmp.eq.s32.totalorder %s1474_s30, 1 }
  0x11   : > { %s2263_s19 = scalar_select %p1964_p6, 1, 0 }
  0x12   : > { %p1667_p10 = scmp.lt.s32.totalorder %s1834_s28, 2  ;;  %p1971_p11 = por %p325_p7, %p43_p0 }
  0x13   : > { %p1975_p12 = por %p331_p8, %p49_p3  ;;  %s387_s22 = sand.u32 1, %s1830_s27  }
  0x14   : > { %s2264_s20 = scalar_select %p1971_p11, 1, 0 }
  0x15   : > { %s2265_s21 = scalar_select %p1975_p12, 1, 0 }
  0x16   : > { %s1478_s23 = sshll.u32 %s1834_s28, 6  ;;  %s1477_s24 = sshll.u32 %s387_s22, 2 }
  0x17   : > { %2266 = sst [smem:[#allocation12_spill]] %s2265_s21  ;;  %s1984_s17 = scalar_lea.hbm %s2235_s0, %s1478_s23 }
  0x18   : > { %s391_s30 = scalar_lea.vmem [#allocation2], %s1477_s24  ;;  %p1988_p13 = pnand %p1667_p10, %p1960_p5 }
  0x19   : > { %s398_s14 = sshll.u32 %s391_s30, 4  ;;  %s388_s27 = scalar_lea.sflag [#allocation3], %s387_s22  ;;  %s1992_s14 = int_to_ptr.vmem [resolvable:$true] %s398_s14 }
  0x1a   : > { %s1742_s21 = scalar_lea.hbm %s1984_s17, 64  ;;  %p1744_p3 = pneg %p1988_p13 }
  0x1b   : > { %p1743_p2 = scmp.ne.s32.totalorder %s1984_s17, %s1742_s21  ;;  %s1747_s18 = scalar_lea.hbm %s2235_s0, 128 }
  0x1c   : > { %p1748_p5 = scmp.lt.s32.totalorder %s1984_s17, %s2235_s0  ;;  %p1749_p8 = scmp.lt.s32.totalorder %s1747_s18, %s1742_s21 }
  0x1d   : > { %p1745_p4 = pnand %p1744_p3, %p1743_p2 }
  0x1e   : > { %p1750_p10 = por %p1749_p8, %p1748_p5 }
  0x1f   : > { %p1746_p7 = pneg %p1745_p4 }
  0x21   : > { %p1751_p9 = pnand %p1750_p10, %p1746_p7 }
  0x23   : > { %1754 = shalt.err (!%p1751_p9)
}
  0x24   : > { %s1755_s22 = scalar_lea.vmem %s1992_s14, 64  ;;  %s1836_s30 = smov [#allocation2]  }
  0x25   : > { %p1756_p0 = scmp.ne.s32.totalorder %s1992_s14, %s1755_s22  ;;  %s1760_s13 = sshll.u32 %s1836_s30, 4  ;;  %s1761_s13 = int_to_ptr.vmem [resolvable:$false] %s1760_s13 }
  0x26   : > { %s1762_s23 = scalar_lea.vmem %s1761_s13, 128  ;;  %p1763_p4 = scmp.lt.s32.totalorder %s1992_s14, %s1761_s13 }
  0x27   : > { %p1758_p1 = pnand %p1756_p0, %p1744_p3  ;;  %p1764_p12 = scmp.lt.s32.totalorder %s1762_s23, %s1755_s22 }
  0x29   : > { %p1759_p2 = pneg %p1758_p1  ;;  %p1765_p11 = por %p1764_p12, %p1763_p4 }
  0x2b   : > { %p1766_p6 = pnand %p1765_p11, %p1759_p2 }
  0x2d   : > { %1769 = shalt.err (!%p1766_p6)
}
  0x2e   : > { %1662 = dma.hbm_to_vmem [thread:$0]  (!%p1988_p13), %s1984_s17, 64, %s1992_s14, %s388_s27  }
  0x2f   : > { %p2268_p9 = scmp.lt.s32.totalorder %s1834_s28, 3  ;;  %p2269_p7 = scmp.ge.s32.totalorder %s1834_s28, 1 }
  0x31   : > { %p404_p0 = pnand %p2269_p7, %p2268_p9 }
  0x32   : > { %s2019_s21 = sand.u32 (!%p404_p0), 1, %s1826_s26   ;;  %p2270_p6 = scmp.ne.s32.totalorder (!%p404_p0), %s2263_s19, 0 }
  0x33   : > { %407 = sbr.rel (%p404_p0) target bundleno = 3548 (0xddc), region = 72  ;;  %s1480_s13 = sshll.u32 (!%p404_p0), %s2019_s21, 2 }
  0x34   : > { %s410_s24 = scalar_lea.sflag (!%p404_p0), [#allocation3], %s2019_s21  ;;  %s413_s18 = scalar_lea.vmem (!%p404_p0), [#allocation2], %s1480_s13 }
  0x38   : > { %1813 = dma.done.wait (%p2270_p6), %s410_s24, 64  }
  0x39   : > { %1815 = vsyncadd (%p2270_p6), %s410_s24, 4294967232  ;;  %v1837_v0 = vmov 0.0   ;;  %vm1838_vm0 = vmmov 0   ;;  %v1714_v1 = vld [vmem:[%s2236_s1 + $0x8] sm:$0xff]   ;;  %v1715_v2 = vld [vmem:[%s2236_s1] sm:$0xff]   ;;  %vm482_vm1 = vcmask 261120  }
  0x3a   : > { %1555 = vmatprep.subr.bf16.mxu1 %v1837_v0  ;;  %1559 = vmatprep.mubr.msk.bf16.mxu1 %vm1838_vm0, %v1837_v0  ;;  %v2040_v3 = vld [vmem:[%s413_s18] sm:$0xf]  ;;  %s1839_s16 = smov 96   ;;  %s1840_s22 = smov 120   ;;  %vm532_vm2 = vcmask 64512   ;;  %vm596_vm3 = vcmask 1043456  }
  0x3b   : > { %1569 = vmatprep.subr.bf16.mxu0 %v1837_v0  ;;  %1571 = vmatprep.mubr.msk.bf16.mxu0 %vm1838_vm0, %v1837_v0  ;;  %v1482_v4 = vld [vmem:[%s2237_s2] ss:$0 sm:$0xff]  ;;  %s1841_s30 = smov 88   ;;  %s1842_s23 = smov 64   ;;  %v1490_v52 = vld [vmem:[%s2238_s3 + $0x4] sm:$0xf] }
  0x3c   : > { %1556 = vmatpush3.bf16.msra.mxu1 %v1714_v1  ;;  %s1843_s13 = smov 56   ;;  %s1844_s24 = smov 112   ;;  %v641_v50 = vld [vmem:[%s2238_s3] sm:$0xf]  ;;  %v760_v53 = vsel %vm596_vm3, %v1490_v52, 0  ;;  %vm1315_vm4 = vcmask 523264  }
  0x3d   : > { %1557 = vmatprep.subr.bf16.mxu1 %v1837_v0  ;;  %s1845_s18 = smov 80   ;;  %v806_v51 = vsel %vm596_vm3, %v641_v50, 0  ;;  %s1846_s19 = smov 72  }
  0x3e   : > { %s1847_s15 = smov 104   ;;  %s1517_s25 = sshll.u32 %s1942_s29, 7 }
  0x3f   : > { %p2272_p12 = scmp.ne.s32.totalorder %s2264_s20, 0 }
  0x40   : > { %1558 = vmatpush3.bf16.msra.mxu1 %v1715_v2 }
  0x41   : > { %1563 = vmatprep.subr.bf16.mxu1 %v1837_v0 }
  0x43   : > { %1560 = vmatmul.mubr.msk.bf16.vlgmr.msra.gmra.mxu1 %vm482_vm1, %v2040_v3 }
  0x44   : > { %1565 = vmatprep.mubr.msk.bf16.mxu1 %vm1838_vm0, %v1837_v0 }
 0x103   : > { %v520_v5 = vpop.f32.mrf.mxu1 }
 0x104   : > { %v521_v6 = vadd.f32 %v1482_v4, %v520_v5 }
 0x105   : > { %v1561_v7 = vpop.f32.mrf.mxu1 }
 0x106   : > { %v526_v8 = vmul.f32 0.35355338, %v521_v6  ;;  %v2050_v9 = vpack.c.bf16 %v521_v6, %v521_v6 }
 0x107   : > { %v523_v10 = vpop.f32.mrf.mxu1 }
 0x108   : > { %v2052_v11 = vpack.c.bf16 %v526_v8, %v526_v8  ;;  %530 = vrot.lane.b32.xlu0 %v2050_v9, %s1839_s16  ;;  %s1848_s16 = smov 48  }
 0x109   : > { %v1562_v12 = vpop.f32.mrf.mxu1 }
 0x10a   : > { %643 = vrot.lane.b32.xlu1 %v2052_v11, %s1840_s22  ;;  %s1391_s22 = scalar_lea.sflag [#allocation4], %s2019_s21 }
 0x10c   : > { %645 = vrot.lane.b32.xlu0 %v2050_v9, %s1841_s30  ;;  %s1481_s30 = sshll.u32 %s2019_s21, 3 }
 0x10d   : > { %s455_s27 = scalar_lea.vmem [#allocation5], %s1481_s30 }
 0x10e   : > { %s1404_s14 = sshll.u32 %s455_s27, 4  ;;  %s1405_s14 = int_to_ptr.vmem [resolvable:$true] %s1404_s14 }
 0x17a   : > { %v531_v13 = vpop.permute.xlu0 %530 }
 0x17b   : > { %v537_v14 = vsel %vm532_vm2, %v531_v13, 0 }
 0x17c   : > { %1564 = vmatpush3.bf16.xpose.msra.mxu1 %v537_v14  ;;  %v644_v17 = vpop.permute.xlu1 %643 }
 0x17d   : > { %1575 = vmatprep.subr.bf16.mxu1 %v1837_v0 }
 0x17e   : > { %v646_v15 = vpop.permute.xlu0 %645 }
 0x17f   : > { %v651_v16 = vsel %vm532_vm2, %v646_v15, 0 }
 0x183   : > { %1566 = vmatmul.mubr.msk.bf16.vlgmr.msra.gmra.mxu1 %vm532_vm2, %v2052_v11 }
 0x184   : > { %1576 = vmatpush3.bf16.xpose.msra.mxu1 %v651_v16  ;;  %1577 = vmatprep.mubr.msk.bf16.mxu1 %vm1838_vm0, %v1837_v0 }
 0x185   : > { %1587 = vmatprep.subr.bf16.mxu1 %v1837_v0 }
 0x18b   : > { %1578 = vmatmul.mubr.msk.bf16.vlgmr.msra.gmra.mxu1 %vm532_vm2, %v644_v17 }
 0x18c   : > { %1589 = vmatprep.mubr.msk.bf16.mxu1 %vm1838_vm0, %v1837_v0  ;;  %1588 = vmatpush3.bf16.msra.mxu1 %v760_v53 }
 0x18d   : > { %1599 = vmatprep.subr.bf16.mxu1 %v1837_v0 }
 0x243   : > { %v573_v18 = vpop.f32.mrf.mxu1 }
 0x244   : > { %v579_v19 = vsel %vm532_vm2, %v573_v18, -inf }
 0x245   : > { %580 = vmax.xlane.f32.xlu1 %v579_v19  ;;  %v1567_v20 = vpop.f32.mrf.mxu1 }
 0x247   : > { %v576_v21 = vpop.f32.mrf.mxu1 }
 0x249   : > { %v1568_v22 = vpop.f32.mrf.mxu1 }
 0x24b   : > { %v687_v23 = vpop.f32.mrf.mxu1 }
 0x24c   : > { %v693_v24 = vsel %vm532_vm2, %v687_v23, -inf }
 0x24d   : > { %694 = vmax.xlane.f32.xlu0 %v693_v24  ;;  %v1579_v25 = vpop.f32.mrf.mxu1 }
 0x24f   : > { %v690_v26 = vpop.f32.mrf.mxu1 }
 0x251   : > { %v1580_v27 = vpop.f32.mrf.mxu1 }
 0x2ce   : > { %v581_v28 = vpop.xlane.xlu1 %580 }
 0x2cf   : > { %v582_v29 = vsub.f32 %v573_v18, %v581_v28 }
 0x2d1   : > { %v583_v30 = vmul.f32 1.442695, %v582_v29 }
 0x2d3   : > { %1722 = vpow2.f32 %v583_v30 }
 0x2d6   : > { %v695_v31 = vpop.xlane.xlu0 %694 }
 0x2d7   : > { %v696_v32 = vsub.f32 %v687_v23, %v695_v31 }
 0x2d9   : > { %v697_v33 = vmul.f32 1.442695, %v696_v32 }
 0x2db   : > { %1724 = vpow2.f32 %v697_v33 }
 0x2e0   : > { %v1723_v34 = vpop.eup %1722 }
 0x2e1   : > { %v585_v35 = vsel %vm532_vm2, %v1723_v34, 0.0 }
 0x2e2   : > { %586 = vadd.xlane.f32.xlu0 %v585_v35 }
 0x2e8   : > { %v1725_v36 = vpop.eup %1724 }
 0x2e9   : > { %v699_v37 = vsel %vm532_vm2, %v1725_v36, 0.0 }
 0x2ea   : > { %700 = vadd.xlane.f32.xlu1 %v699_v37 }
 0x2f8   : > { %591 = vrot.lane.b32.xlu0 %v2050_v9, %s1842_s23  ;;  %s1849_s23 = smov 40  }
 0x2fb   : > { %705 = vrot.lane.b32.xlu1 %v2050_v9, %s1843_s13  ;;  %s1850_s13 = smov [#allocation5]  }
 0x2fc   : > { %848 = vrot.lane.b32.xlu0 %v2052_v11, %s1844_s24  ;;  %s1774_s24 = sshll.u32 %s1850_s13, 4  ;;  %s1775_s24 = int_to_ptr.vmem [resolvable:$false] %s1774_s24 }
 0x2fd   : > { %s1776_s29 = scalar_lea.vmem %s1775_s24, 256  ;;  %p1777_p3 = scmp.lt.s32.totalorder %s1405_s14, %s1775_s24 }
 0x2ff   : > { %850 = vrot.lane.b32.xlu1 %v2050_v9, %s1845_s18 }
 0x36b   : > { %v587_v38 = vpop.xlane.xlu0 %586 }
 0x36c   : > { %1726 = vrcp.f32 %v587_v38 }
 0x36f   : > { %v592_v39 = vpop.permute.xlu0 %591 }
 0x370   : > { %v598_v40 = vsel %vm596_vm3, %v592_v39, 0 }
 0x371   : > { %1570 = vmatpush3.bf16.msra.mxu0 %v598_v40 }
 0x372   : > { %1581 = vmatprep.subr.bf16.mxu0 %v1837_v0 }
 0x373   : > { %v701_v41 = vpop.xlane.xlu1 %700  ;;  %v849_v4 = vpop.permute.xlu0 %848 }
 0x374   : > { %1728 = vrcp.f32 %v701_v41 }
 0x377   : > { %v706_v44 = vpop.permute.xlu1 %705 }
 0x378   : > { %v711_v46 = vsel %vm596_vm3, %v706_v44, 0 }
 0x379   : > { %v1727_v42 = vpop.eup %1726 }
 0x37a   : > { %v589_v43 = vmul.f32 %v1727_v42, %v1723_v34  ;;  %v1495_v34 = vld [vmem:[%s2238_s3 + $0x8] sm:$0xf] }
 0x37b   : > { %v851_v59 = vpop.permute.xlu1 %850  ;;  %v965_v35 = vsel %vm596_vm3, %v1495_v34, 0 }
 0x37c   : > { %v590_v45 = vpack.c.bf16 %v589_v43, %v589_v43  ;;  %v856_v63 = vsel %vm532_vm2, %v851_v59, 0 }
 0x37e   : > { %1572 = vmatmul.mubr.msk.bf16.vlgmr.msra.gmra.mxu0 %vm532_vm2, %v590_v45 }
 0x37f   : > { %1582 = vmatpush3.bf16.msra.mxu0 %v711_v46  ;;  %1583 = vmatprep.mubr.msk.bf16.mxu0 %vm1838_vm0, %v1837_v0 }
 0x380   : > { %1593 = vmatprep.subr.bf16.mxu0 %v1837_v0 }
 0x381   : > { %v1729_v47 = vpop.eup %1728 }
 0x382   : > { %v703_v48 = vmul.f32 %v1729_v47, %v1725_v36 }
 0x384   : > { %v704_v49 = vpack.c.bf16 %v703_v48, %v703_v48 }
 0x386   : > { %1584 = vmatmul.mubr.msk.bf16.vlgmr.msra.gmra.mxu0 %vm532_vm2, %v704_v49 }
 0x387   : > { %1595 = vmatprep.mubr.msk.bf16.mxu0 %vm1838_vm0, %v1837_v0  ;;  %1594 = vmatpush3.bf16.msra.mxu0 %v806_v51 }
 0x388   : > { %1605 = vmatprep.subr.bf16.mxu0 %v1837_v0 }
 0x43e   : > { %v634_v54 = vpop.f32.mrf.mxu0 }
 0x43f   : > { %v640_v55 = vpack.c.bf16 %v634_v54, %v634_v54  ;;  %v1499_v54 = vld [vmem:[%s2238_s3 + $0xc] sm:$0xf] }
 0x440   : > { %v1573_v56 = vpop.f32.mrf.mxu0 }
 0x441   : > { %1596 = vmatmul.mubr.msk.bf16.vlgmr.msra.gmra.mxu0 %vm532_vm2, %v640_v55  ;;  %v1125_v55 = vsel %vm596_vm3, %v1499_v54, 0 }
 0x442   : > { %v637_v57 = vpop.f32.mrf.mxu0  ;;  %1607 = vmatprep.mubr.msk.bf16.mxu0 %vm1838_vm0, %v1837_v0 }
 0x444   : > { %v1574_v58 = vpop.f32.mrf.mxu0 }
 0x446   : > { %v747_v60 = vpop.f32.mrf.mxu0 }
 0x447   : > { %v753_v61 = vpack.c.bf16 %v747_v60, %v747_v60 }
 0x448   : > { %v1585_v62 = vpop.f32.mrf.mxu0 }
 0x449   : > { %1590 = vmatmul.mubr.msk.bf16.vlgmr.msra.gmra.mxu1 %vm532_vm2, %v753_v61 }
 0x44a   : > { %1600 = vmatpush3.bf16.xpose.msra.mxu1 %v856_v63  ;;  %v750_v1 = vpop.f32.mrf.mxu0  ;;  %1601 = vmatprep.mubr.msk.bf16.mxu1 %vm1838_vm0, %v1837_v0 }
 0x44b   : > { %1611 = vmatprep.subr.bf16.mxu1 %v1837_v0 }
 0x44c   : > { %v1586_v2 = vpop.f32.mrf.mxu0 }
 0x451   : > { %1602 = vmatmul.mubr.msk.bf16.vlgmr.msra.gmra.mxu1 %vm532_vm2, %v849_v4 }
 0x452   : > { %1613 = vmatprep.mubr.msk.bf16.mxu1 %vm1838_vm0, %v1837_v0  ;;  %1612 = vmatpush3.bf16.msra.mxu1 %v965_v35  ;;  %v1720_v35 = vld [vmem:[%s2242_s7 + $0x8] sm:$0xff]  }
 0x453   : > { %1623 = vmatprep.subr.bf16.mxu1 %v1837_v0 }
 0x501   : > { %v842_v5 = vpop.f32.mrf.mxu0 }
 0x503   : > { %v1597_v6 = vpop.f32.mrf.mxu0 }
 0x505   : > { %v845_v7 = vpop.f32.mrf.mxu0 }
 0x506   : > { %v1501_v7 = vld [vmem:[%s2239_s4] ss:$0 sm:$0xff] }
 0x507   : > { %v1598_v8 = vpop.f32.mrf.mxu0 }
 0x509   : > { %v796_v10 = vpop.f32.mrf.mxu1 }
 0x50a   : > { %v2107_v12 = vadd.f32 %v842_v5, %v796_v10  ;;  %v458_v10 = vunpack.c.l.bf16 %v2040_v3  ;;  %v1717_v3 = vld [vmem:[%s2240_s5] sm:$0xff]  }
 0x50b   : > { %v1591_v13 = vpop.f32.mrf.mxu1 }
 0x50d   : > { %v799_v14 = vpop.f32.mrf.mxu1 }
 0x50f   : > { %v1592_v15 = vpop.f32.mrf.mxu1 }
 0x511   : > { %v892_v16 = vpop.f32.mrf.mxu1 }
 0x512   : > { %v898_v17 = vsel %vm532_vm2, %v892_v16, -inf }
 0x513   : > { %899 = vmax.xlane.f32.xlu1 %v898_v17  ;;  %v1603_v18 = vpop.f32.mrf.mxu1 }
 0x515   : > { %v895_v19 = vpop.f32.mrf.mxu1 }
 0x517   : > { %v1604_v20 = vpop.f32.mrf.mxu1 }
 0x524   : > { %1010 = vrot.lane.b32.xlu1 %v2050_v9, %s1846_s19 }
 0x528   : > { %1008 = vrot.lane.b32.xlu1 %v2052_v11, %s1847_s15  ;;  %s2271_s15 = sld [smem:[#allocation13_spill]] }
 0x59c   : > { %v900_v21 = vpop.xlane.xlu1 %899 }
 0x59d   : > { %v901_v22 = vsub.f32 %v892_v16, %v900_v21 }
 0x59f   : > { %v902_v23 = vmul.f32 1.442695, %v901_v22 }
 0x5a0   : > { %v1011_v30 = vpop.permute.xlu1 %1010 }
 0x5a1   : > { %1730 = vpow2.f32 %v902_v23  ;;  %v1016_v32 = vsel %vm532_vm2, %v1011_v30, 0  ;;  %v1716_v23 = vld [vmem:[%s2240_s5 + $0x8] sm:$0xff]  }
 0x5a4   : > { %v1009_v33 = vpop.permute.xlu1 %1008 }
 0x5ae   : > { %v1731_v24 = vpop.eup %1730 }
 0x5af   : > { %v904_v25 = vsel %vm532_vm2, %v1731_v24, 0.0 }
 0x5b0   : > { %905 = vadd.xlane.f32.xlu0 %v904_v25  ;;  %v1719_v25 = vld [vmem:[%s2242_s7 + $0x10] sm:$0xff]  }
 0x5c6   : > { %910 = vrot.lane.b32.xlu0 %v2050_v9, %s1848_s16  ;;  %s1402_s16 = scalar_lea.hbm %s2271_s15, %s1517_s25 }
 0x639   : > { %v906_v26 = vpop.xlane.xlu0 %905 }
 0x63a   : > { %1732 = vrcp.f32 %v906_v26 }
 0x63d   : > { %v911_v27 = vpop.permute.xlu0 %910 }
 0x63e   : > { %v916_v28 = vsel %vm596_vm3, %v911_v27, 0 }
 0x63f   : > { %1606 = vmatpush3.bf16.msra.mxu0 %v916_v28 }
 0x640   : > { %1617 = vmatprep.subr.bf16.mxu0 %v1837_v0 }
 0x647   : > { %v1733_v11 = vpop.eup %1732 }
 0x648   : > { %v908_v29 = vmul.f32 %v1733_v11, %v1731_v24  ;;  %v1718_v24 = vld [vmem:[%s2242_s7 + $0x18] sm:$0xff]  }
 0x64a   : > { %v909_v31 = vpack.c.bf16 %v908_v29, %v908_v29  ;;  %v1502_v29 = vld [vmem:[%s2244_s9] ss:$0 sm:$0xff] }
 0x64c   : > { %1608 = vmatmul.mubr.msk.bf16.vlgmr.msra.gmra.mxu0 %vm532_vm2, %v909_v31  ;;  %v1503_v31 = vld [vmem:[%s2245_s10] ss:$0 sm:$0xff] }
 0x64d   : > { %1618 = vmatpush3.bf16.xpose.msra.mxu0 %v1016_v32  ;;  %1619 = vmatprep.mubr.msk.bf16.mxu0 %vm1838_vm0, %v1837_v0 }
 0x64e   : > { %1629 = vmatprep.subr.bf16.mxu0 %v1837_v0 }
 0x654   : > { %1620 = vmatmul.mubr.msk.bf16.vlgmr.msra.gmra.mxu0 %vm532_vm2, %v1009_v33 }
 0x655   : > { %1631 = vmatprep.mubr.msk.bf16.mxu0 %vm1838_vm0, %v1837_v0  ;;  %1630 = vmatpush3.bf16.msra.mxu0 %v1125_v55 }
 0x656   : > { %1643 = vmatprep.subr.bf16.mxu0 %v1837_v0 }
 0x70c   : > { %v952_v36 = vpop.f32.mrf.mxu0 }
 0x70d   : > { %v958_v37 = vpack.c.bf16 %v952_v36, %v952_v36  ;;  %v1721_v36 = vld [vmem:[%s2242_s7] sm:$0xff]  }
 0x70e   : > { %v1609_v38 = vpop.f32.mrf.mxu0 }
 0x70f   : > { %1614 = vmatmul.mubr.msk.bf16.vlgmr.msra.gmra.mxu1 %vm532_vm2, %v958_v37  ;;  %v1504_v37 = vld [vmem:[%s2241_s6] ss:$0 sm:$0xff] }
 0x710   : > { %v955_v39 = vpop.f32.mrf.mxu0  ;;  %1625 = vmatprep.mubr.msk.bf16.mxu1 %vm1838_vm0, %v1837_v0 }
 0x712   : > { %v1610_v40 = vpop.f32.mrf.mxu0 }
 0x714   : > { %v1052_v41 = vpop.f32.mrf.mxu0 }
 0x715   : > { %v1058_v42 = vsel %vm532_vm2, %v1052_v41, -inf }
 0x716   : > { %1059 = vmax.xlane.f32.xlu0 %v1058_v42  ;;  %v1621_v43 = vpop.f32.mrf.mxu0 }
 0x718   : > { %v1055_v44 = vpop.f32.mrf.mxu0 }
 0x71a   : > { %v1622_v45 = vpop.f32.mrf.mxu0 }
 0x72c   : > { %1070 = vrot.lane.b32.xlu0 %v2050_v9, %s1849_s23  ;;  %s1770_s23 = scalar_lea.vmem %s1405_s14, 128 }
 0x72d   : > { %p1771_p11 = scmp.ne.s32.totalorder %s1405_s14, %s1770_s23  ;;  %p1778_p5 = scmp.lt.s32.totalorder %s1776_s29, %s1770_s23 }
 0x72f   : > { %p1772_p13 = pnand %p1771_p11, %p2272_p12  ;;  %p1779_p8 = por %p1778_p5, %p1777_p3 }
 0x731   : > { %p1773_p1 = pneg %p1772_p13 }
 0x733   : > { %p1780_p10 = pnand %p1779_p8, %p1773_p1 }
 0x79f   : > { %v1060_v46 = vpop.xlane.xlu0 %1059 }
 0x7a0   : > { %v1061_v47 = vsub.f32 %v1052_v41, %v1060_v46 }
 0x7a2   : > { %v1062_v48 = vmul.f32 1.442695, %v1061_v47 }
 0x7a3   : > { %v1071_v49 = vpop.permute.xlu0 %1070 }
 0x7a4   : > { %1734 = vpow2.f32 %v1062_v48  ;;  %v1076_v50 = vsel %vm596_vm3, %v1071_v49, 0 }
 0x7a5   : > { %1624 = vmatpush3.bf16.msra.mxu1 %v1076_v50 }
 0x7a6   : > { %1635 = vmatprep.subr.bf16.mxu1 %v1837_v0 }
 0x7b1   : > { %v1735_v51 = vpop.eup %1734 }
 0x7b2   : > { %v1064_v52 = vsel %vm532_vm2, %v1735_v51, 0.0 }
 0x7b3   : > { %1065 = vadd.xlane.f32.xlu1 %v1064_v52 }
 0x7cf   : > { %v1001_v53 = vpop.f32.mrf.mxu1 }
 0x7d0   : > { %v1007_v9 = vadd.f32 %v1001_v53, %v2107_v12 }
 0x7d1   : > { %v1615_v56 = vpop.f32.mrf.mxu1 }
 0x7d3   : > { %v1004_v57 = vpop.f32.mrf.mxu1 }
 0x7d5   : > { %v1616_v58 = vpop.f32.mrf.mxu1 }
 0x83c   : > { %v1066_v59 = vpop.xlane.xlu1 %1065 }
 0x83d   : > { %1736 = vrcp.f32 %v1066_v59 }
 0x84a   : > { %v1737_v60 = vpop.eup %1736 }
 0x84b   : > { %v1068_v61 = vmul.f32 %v1737_v60, %v1735_v51  ;;  %v1514_v60 = vld [vmem:[%s2246_s11] ss:$0 sm:$0xff] }
 0x84d   : > { %v1069_v62 = vpack.c.bf16 %v1068_v61, %v1068_v61 }
 0x84f   : > { %1626 = vmatmul.mubr.msk.bf16.vlgmr.msra.gmra.mxu1 %vm532_vm2, %v1069_v62  ;;  %v1515_v62 = vld [vmem:[%s2247_s12] ss:$0 sm:$0xff] }
 0x850   : > { %1639 = vmatprep.mubr.msk.bf16.mxu1 %vm1838_vm0, %v1837_v0  ;;  %1636 = vmatpush3.bf16.msra.mxu1 %v1716_v23 }
 0x851   : > { %1637 = vmatprep.subr.bf16.mxu1 %v1837_v0 }
 0x854   : > { %1638 = vmatpush3.bf16.msra.mxu1 %v1717_v3 }
 0x90f   : > { %v1112_v63 = vpop.f32.mrf.mxu1 }
 0x910   : > { %v1118_v1 = vpack.c.bf16 %v1112_v63, %v1112_v63 }
 0x911   : > { %v1627_v2 = vpop.f32.mrf.mxu1 }
 0x912   : > { %1632 = vmatmul.mubr.msk.bf16.vlgmr.msra.gmra.mxu0 %vm532_vm2, %v1118_v1 }
 0x913   : > { %v1115_v4 = vpop.f32.mrf.mxu1  ;;  %1651 = vmatprep.mubr.msk.bf16.mxu0 %vm1838_vm0, %v1837_v0  ;;  %1644 = vmatpush3.bf16.msra.mxu0 %v1718_v24 }
 0x914   : > { %1645 = vmatprep.subr.bf16.mxu0 %v1837_v0 }
 0x915   : > { %v1628_v5 = vpop.f32.mrf.mxu1 }
 0x917   : > { %1646 = vmatpush3.bf16.msra.mxu0 %v1719_v25 }
 0x918   : > { %1647 = vmatprep.subr.bf16.mxu0 %v1837_v0 }
 0x91b   : > { %1648 = vmatpush3.bf16.msra.mxu0 %v1720_v35 }
 0x91c   : > { %1649 = vmatprep.subr.bf16.mxu0 %v1837_v0  ;;  %v1508_v0 = vld [vmem:[%s2243_s8] ss:$0 sm:$0xff] }
 0x91f   : > { %1650 = vmatpush3.bf16.msra.mxu0 %v1721_v36 }
 0x9d2   : > { %v1161_v6 = vpop.f32.mrf.mxu0 }
 0x9d3   : > { %v1167_v8 = vadd.f32 %v1161_v6, %v1007_v9 }
 0x9d4   : > { %v1633_v12 = vpop.f32.mrf.mxu0 }
 0x9d5   : > { %v1175_v13 = vadd.f32 %v1501_v7, %v1167_v8 }
 0x9d6   : > { %v1164_v14 = vpop.f32.mrf.mxu0 }
 0x9d7   : > { %v1176_v15 = vadd.f32 %v1175_v13, %v458_v10 }
 0x9d8   : > { %v1634_v16 = vpop.f32.mrf.mxu0 }
 0x9d9   : > { %v1179_v17 = vsel %vm482_vm1, %v1176_v15, 0.0 }
 0x9da   : > { %1180 = vadd.xlane.f32.xlu1 %v1179_v17 }
 0xa63   : > { %v1181_v18 = vpop.xlane.xlu1 %1180 }
 0xa64   : > { %v1183_v19 = vmul.f32 0.03125, %v1181_v18 }
 0xa66   : > { %v1184_v20 = vsub.f32 %v1176_v15, %v1183_v19 }
 0xa68   : > { %v1185_v21 = vmul.f32 %v1184_v20, %v1184_v20 }
 0xa6a   : > { %v1186_v22 = vsel %vm482_vm1, %v1185_v21, 0.0 }
 0xa6b   : > { %1187 = vadd.xlane.f32.xlu1 %v1186_v22 }
 0xaf4   : > { %v1188_v26 = vpop.xlane.xlu1 %1187 }
 0xaf5   : > { %v1189_v27 = vmul.f32 0.03125, %v1188_v26 }
 0xaf7   : > { %v1190_v28 = vadd.f32 1e-05, %v1189_v27 }
 0xaf9   : > { %1738 = vrsqrt.f32 %v1190_v28 }
 0xb06   : > { %v1739_v11 = vpop.eup %1738 }
 0xb07   : > { %v1192_v30 = vmul.f32 %v1739_v11, %v1184_v20 }
 0xb09   : > { %v1199_v32 = vmul.f32 %v1502_v29, %v1192_v30 }
 0xb0b   : > { %v1206_v33 = vadd.f32 %v1503_v31, %v1199_v32 }
 0xb0d   : > { %v1207_v34 = vpack.c.bf16 %v1206_v33, %v1206_v33 }
 0xb0f   : > { %1640 = vmatmul.mubr.msk.bf16.vlgmr.msra.gmra.mxu1 %vm482_vm1, %v1207_v34 }
 0xbcf   : > { %v1268_v38 = vpop.f32.mrf.mxu1 }
 0xbd0   : > { %v1269_v39 = vadd.f32 %v1504_v37, %v1268_v38 }
 0xbd1   : > { %v1641_v40 = vpop.f32.mrf.mxu1 }
 0xbd2   : > { %v1274_v41 = vmax.f32 %v1269_v39, 0.0 }
 0xbd3   : > { %v1271_v42 = vpop.f32.mrf.mxu1 }
 0xbd4   : > { %v1275_v43 = vpack.c.bf16 %v1274_v41, %v1274_v41 }
 0xbd5   : > { %v1642_v44 = vpop.f32.mrf.mxu1 }
 0xbd6   : > { %1652 = vmatmul.mubr.msk.bf16.vlgmr.msra.gmra.mxu0 %vm1315_vm4, %v1275_v43 }
 0xc96   : > { %v1353_v45 = vpop.f32.mrf.mxu0 }
 0xc97   : > { %v1354_v46 = vadd.f32 %v1508_v0, %v1353_v45 }
 0xc98   : > { %v1653_v47 = vpop.f32.mrf.mxu0 }
 0xc99   : > { %v1359_v48 = vadd.f32 %v1354_v46, %v1206_v33 }
 0xc9a   : > { %v1356_v49 = vpop.f32.mrf.mxu0 }
 0xc9b   : > { %v1362_v50 = vsel %vm482_vm1, %v1359_v48, 0.0 }
 0xc9c   : > { %1363 = vadd.xlane.f32.xlu1 %v1362_v50  ;;  %v1654_v51 = vpop.f32.mrf.mxu0 }
 0xd25   : > { %v1364_v52 = vpop.xlane.xlu1 %1363 }
 0xd26   : > { %v1365_v53 = vmul.f32 0.03125, %v1364_v52 }
 0xd28   : > { %v1366_v54 = vsub.f32 %v1359_v48, %v1365_v53 }
 0xd2a   : > { %v1367_v9 = vmul.f32 %v1366_v54, %v1366_v54 }
 0xd2c   : > { %v1368_v55 = vsel %vm482_vm1, %v1367_v9, 0.0 }
 0xd2d   : > { %1369 = vadd.xlane.f32.xlu1 %v1368_v55 }
 0xdb6   : > { %v1370_v56 = vpop.xlane.xlu1 %1369 }
 0xdb7   : > { %v1371_v57 = vmul.f32 0.03125, %v1370_v56 }
 0xdb9   : > { %v1372_v58 = vadd.f32 1e-05, %v1371_v57 }
 0xdbb   : > { %1740 = vrsqrt.f32 %v1372_v58 }
 0xdc8   : > { %v1741_v59 = vpop.eup %1740 }
 0xdc9   : > { %v1374_v61 = vmul.f32 %v1741_v59, %v1366_v54 }
 0xdcb   : > { %v1381_v63 = vmul.f32 %v1514_v60, %v1374_v61 }
 0xdcd   : > { %v1388_v1 = vadd.f32 %v1515_v62, %v1381_v63 }
 0xdcf   : > { %1389 = vst.msk [vmem:[%s455_s27] sm:$0xff] %vm482_vm1, %v1388_v1 }
 0xdd0   : > { %1783 = shalt.err (!%p1780_p10)
}
 0xdd1   : > { %s1784_s30 = scalar_lea.hbm %s1402_s16, 128  ;;  %s1788_s25 = scalar_lea.hbm %s2271_s15, 256 }
 0xdd2   : > { %p1785_p2 = scmp.ne.s32.totalorder %s1402_s16, %s1784_s30  ;;  %p1789_p7 = scmp.lt.s32.totalorder %s1402_s16, %s2271_s15 }
 0xdd3   : > { %p1790_p0 = scmp.lt.s32.totalorder %s1788_s25, %s1784_s30 }
 0xdd4   : > { %p1786_p4 = pnand %p1785_p2, %p2272_p12 }
 0xdd5   : > { %p1791_p6 = por %p1790_p0, %p1789_p7 }
 0xdd6   : > { %p1787_p9 = pneg %p1786_p4 }
 0xdd8   : > { %p1792_p11 = pnand %p1791_p6, %p1787_p9 }
 0xdda   : > { %1795 = shalt.err (!%p1792_p11)
}
 0xddb   : > { %1657 = dma.vmem_to_hbm [thread:$0]  (%p2272_p12), %s1405_s14, 128, %s1402_s16, %s1391_s22  }
 0xddc PF: > { %s2273_s19 = sld [smem:[#allocation8_spill]]  ;;  %p2276_p1 = scmp.ge.s32.totalorder %s1834_s28, 2 }
 0xddd   : > { %s2274_s23 = sld [smem:[#allocation12_spill]] }
 0xde2   : > { %s1416_s13 = sand.u32 1, %s2273_s19  }
 0xde3   : > { %p2275_p13 = scmp.ne.s32.totalorder %s2274_s23, 0  ;;  %s1417_s24 = scalar_lea.sflag [#allocation4], %s1416_s13 }
 0xde5   : > { %p1664_p3 = pnand %p2276_p1, %p2275_p13 }
 0xde7   : > { %p1665_p5 = pneg %p1664_p3 }
 0xde9   : > { %1817 = dma.done.wait (%p1665_p5), %s1417_s24, 128  }
 0xdea   : > { %1819 = vsyncadd (%p1665_p5), %s1417_s24, 4294967168  ;;  %s2277_s28 = sld [smem:[#allocation10_spill]]  ;;  %s2280_s25 = smov %s1826_s26 }
 0xdeb   : > { %s2278_s29 = sld [smem:[#allocation9_spill]] }
 0xdec   : > { %s2279_s27 = sld [smem:[#allocation11_spill]] }
 0xdf0   : > { %p26_p8 = scmp.ge.s32.totalorder %s2277_s28, 4  }
 0xdf1   : > { %s2281_s26 = smov %s2278_s29 }
 0xdf2   :  { %28 = sbr.rel (!%p26_p8) target bundleno = 7 (0x7), region = 120 }
 0xdf7   :  { %1422 = vsyncpa [#allocation3], 1 }
 0xdf8   :  { %1424 = vsyncpa [#allocation3 + $0x1], 1 }
 0xdf9   :  { %1425 = vsyncpa [#allocation4], 1 }
 0xdfa   :  { %1427 = vsyncpa [#allocation4 + $0x1], 1 }

</bundles_post_ra>
